<compile_context>
chip_gen: v7x
topology: tpu7x:2x2x1
jax: 0.10.0
libtpu: 0.0.40
codegen_flags: <defaults>
</compile_context>

<pallas_src>
import functools
import math

import jax
import jax.numpy as jnp
from jax.experimental import pallas as pl
from jax.experimental.pallas import tpu as pltpu


# ---------------------------------------------------------------------------
# VMEM budget helper: ~70% of physical VMEM (v5e/v6e: ~90 MiB, v7x: ~45 MiB).
# ---------------------------------------------------------------------------
def _vmem_limit_bytes(frac=0.7, fallback=48 * 1024 * 1024):
    try:
        cap = int(pltpu.get_tpu_info().vmem_capacity_bytes)
        if cap >= 64 * 1024 * 1024:
            return int(cap * frac)
    except Exception:
        pass
    return fallback


# ---------------------------------------------------------------------------
# Tiled linear: y = x @ W + b   (x: (M, K), W: (K, N), b: (N,))
# ---------------------------------------------------------------------------
def _linear_kernel(x_ref, w_ref, b_ref, o_ref):
    acc = jnp.dot(x_ref[...], w_ref[...], preferred_element_type=jnp.float32)
    o_ref[...] = (acc + b_ref[...].astype(jnp.float32)).astype(o_ref.dtype)


def _linear(x2d, w, b, *, block_m=512, block_n=None):
    M, K = x2d.shape
    N = w.shape[1]
    bm = min(block_m, M)

    vmem_limit = _vmem_limit_bytes()
    w_bytes = K * N * w.dtype.itemsize
    if block_n is None:
        # Keep the whole weight VMEM-resident (fetched once, constant
        # index_map) when it comfortably fits the scoped budget; otherwise tile
        # the N axis so the working set stays small (v7x: 64 MiB physical).
        block_n = N if w_bytes <= vmem_limit // 4 else 1024
    bn = min(block_n, N)

    b2 = b.reshape(1, N)
    # Weight-column block is the OUTER grid axis so each weight slab is DMA'd
    # once and stays resident while all row tiles stream through it.
    grid = (pl.cdiv(N, bn), pl.cdiv(M, bm))
    return pl.pallas_call(
        _linear_kernel,
        out_shape=jax.ShapeDtypeStruct((M, N), x2d.dtype),
        grid_spec=pltpu.PrefetchScalarGridSpec(
            num_scalar_prefetch=0,
            grid=grid,
            in_specs=[
                pl.BlockSpec((bm, K), lambda n, i: (i, 0)),
                pl.BlockSpec((K, bn), lambda n, i: (0, n)),
                pl.BlockSpec((1, bn), lambda n, i: (0, n)),
            ],
            out_specs=pl.BlockSpec((bm, bn), lambda n, i: (i, n)),
        ),
        compiler_params=pltpu.CompilerParams(
            dimension_semantics=("parallel", "parallel"),
            vmem_limit_bytes=vmem_limit,
        ),
    )(x2d, w, b2)


# ---------------------------------------------------------------------------
# Flash-style causal attention over a fused (3*B*H, T, D) qkv buffer.
# Grid = (B*H, n_lower_triangular_block_pairs); the (q-tile, kv-tile) pair for
# each step comes from scalar-prefetched int32 tables.
# ---------------------------------------------------------------------------
def _flash_attn_kernel(qi_ref, ki_ref, q_ref, k_ref, v_ref, o_ref,
                       q_sc, m_sc, l_sc, acc_sc, *, scale):
    step = pl.program_id(1)
    qi = qi_ref[step]
    ki = ki_ref[step]

    @pl.when(ki == 0)                     # first kv step for this q tile
    def _init():
        m_sc[...] = jnp.full_like(m_sc, -jnp.inf)
        l_sc[...] = jnp.zeros_like(l_sc)
        acc_sc[...] = jnp.zeros_like(acc_sc)
        # Fold 1/sqrt(D) into q once per q tile (hoisted out of the kv loop).
        q_sc[...] = (q_ref[...].astype(jnp.float32) * scale).astype(q_sc.dtype)

    # exp / PV-matmul operands in bf16 on bf16 inputs (v6e/v7x bf16 EUP ~2x);
    # the running max / denom / accumulator and alpha rescale stay in f32.
    p_dtype = jnp.bfloat16 if v_ref.dtype == jnp.bfloat16 else jnp.float32

    def _update(mask_fn):
        s = jax.lax.dot_general(
            q_sc[...], k_ref[...],
            dimension_numbers=(((1,), (1,)), ((), ())),
            preferred_element_type=jnp.float32)            # (blk, blk)
        s = mask_fn(s)
        m_prev = m_sc[...]
        m_new = jnp.maximum(m_prev, jnp.max(s, axis=-1, keepdims=True))
        alpha = jnp.exp(m_prev - m_new)
        p = jnp.exp((s - m_new).astype(p_dtype))
        l_sc[...] = alpha * l_sc[...] + jnp.sum(
            p.astype(jnp.float32), axis=-1, keepdims=True)
        acc_sc[...] = alpha * acc_sc[...] + jnp.dot(
            p, v_ref[...].astype(p_dtype), preferred_element_type=jnp.float32)
        m_sc[...] = m_new

    @pl.when(ki < qi)
    def _interior_block():                # fully visible: no mask work at all
        _update(lambda s: s)

    @pl.when(ki == qi)
    def _diagonal_block_and_finalize():   # the only block that pays the mask
        def mask(s):
            rows = jax.lax.broadcasted_iota(jnp.int32, s.shape, 0)
            cols = jax.lax.broadcasted_iota(jnp.int32, s.shape, 1)
            return jnp.where(rows >= cols, s, jnp.float32(-1e30))
        _update(mask)
        # The diagonal block is also the LAST kv step for this q tile.
        o_ref[...] = (acc_sc[...] / l_sc[...]).astype(o_ref.dtype)


def _flash_attention(qkv, *, block_q=512):
    """qkv: (3, B, H, T, D) fused buffer -> (B, H, T, D) attention output."""
    three, B, H, T, D = qkv.shape
    assert three == 3
    BH = B * H
    blk = min(block_q, T)                 # block_q == block_kv by construction
    assert T % blk == 0, f"T={T} must be divisible by attention block {blk}"
    n_blocks = T // blk

    # Flattened lower-triangular (q-tile, kv-tile) schedule: above-diagonal
    # blocks are never DMA'd and never spend a grid step.
    qi_list, ki_list = [], []
    for i in range(n_blocks):
        for j in range(i + 1):
            qi_list.append(i)
            ki_list.append(j)
    qi_tab = jnp.asarray(qi_list, dtype=jnp.int32)
    ki_tab = jnp.asarray(ki_list, dtype=jnp.int32)
    n_steps = len(qi_list)

    qkv_flat = qkv.reshape(3 * BH, T, D)  # free reshape; q|k|v are row groups
    kernel = functools.partial(_flash_attn_kernel, scale=1.0 / math.sqrt(D))

    out = pl.pallas_call(
        kernel,
        out_shape=jax.ShapeDtypeStruct((BH, T, D), qkv.dtype),
        grid_spec=pltpu.PrefetchScalarGridSpec(
            num_scalar_prefetch=2,
            grid=(BH, n_steps),
            in_specs=[
                pl.BlockSpec((None, blk, D),
                             lambda bh, s, qt, kt: (bh, qt[s], 0)),
                pl.BlockSpec((None, blk, D),
                             lambda bh, s, qt, kt: (BH + bh, kt[s], 0)),
                pl.BlockSpec((None, blk, D),
                             lambda bh, s, qt, kt: (2 * BH + bh, kt[s], 0)),
            ],
            out_specs=pl.BlockSpec((None, blk, D),
                                   lambda bh, s, qt, kt: (bh, qt[s], 0)),
            scratch_shapes=[
                pltpu.VMEM((blk, D), qkv.dtype),     # pre-scaled q tile
                pltpu.VMEM((blk, 1), jnp.float32),   # running max m
                pltpu.VMEM((blk, 1), jnp.float32),   # running denom l
                pltpu.VMEM((blk, D), jnp.float32),   # output accumulator
            ],
        ),
        compiler_params=pltpu.CompilerParams(
            dimension_semantics=("parallel", "arbitrary"),
            vmem_limit_bytes=_vmem_limit_bytes(),
        ),
    )(qi_tab, ki_tab, qkv_flat, qkv_flat, qkv_flat)
    return out.reshape(B, H, T, D)


# ---------------------------------------------------------------------------
# Full CausalSelfAttention forward.
# ---------------------------------------------------------------------------
def causal_self_attention(x, w_qkv, b_qkv, w_proj, b_proj, n_head,
                          *, block_q=512, block_m=512):
    """x: (B, T, C). w_qkv: (C, 3C), b_qkv: (3C,), w_proj: (C, C), b_proj: (C,)."""
    B, T, C = x.shape
    assert C % n_head == 0
    D = C // n_head

    # QKV projection (tiled matmul kernel over B*T rows).
    qkv = _linear(x.reshape(B * T, C), w_qkv, b_qkv, block_m=block_m)

    # One XLA transpose pass to (3, B, H, T, D); the flash kernel reads q/k/v
    # straight out of this single buffer (no per-tensor split copies).
    qkv = qkv.reshape(B, T, 3, n_head, D).transpose(2, 0, 3, 1, 4)

    # Flash-style causal attention (triangular block schedule).
    y = _flash_attention(qkv, block_q=block_q)               # (B, H, T, D)

    # Merge heads and apply the output projection kernel.
    y = y.transpose(0, 2, 1, 3).reshape(B * T, C)
    out = _linear(y, w_proj, b_proj, block_m=block_m)
    return out.reshape(B, T, C)


# ---------------------------------------------------------------------------
# Pure-JAX reference mirroring the PyTorch forward.
# ---------------------------------------------------------------------------
def _reference(x, w_qkv, b_qkv, w_proj, b_proj, n_head):
    B, T, C = x.shape
    D = C // n_head
    qkv = x @ w_qkv + b_qkv
    q, k, v = jnp.split(qkv, 3, axis=-1)
    q = q.reshape(B, T, n_head, D).transpose(0, 2, 1, 3)
    k = k.reshape(B, T, n_head, D).transpose(0, 2, 1, 3)
    v = v.reshape(B, T, n_head, D).transpose(0, 2, 1, 3)
    scores = jnp.einsum("bhqd,bhkd->bhqk", q, k) / math.sqrt(D)
    mask = jnp.tril(jnp.ones((T, T), bool))
    scores = jnp.where(mask, scores, -1e30)
    attn = jax.nn.softmax(scores, axis=-1)
    y = jnp.einsum("bhqk,bhkd->bhqd", attn, v)
    y = y.transpose(0, 2, 1, 3).reshape(B, T, C)
    return y @ w_proj + b_proj


if __name__ == "__main__":
    def _run_case(B, T, C, n_head, dtype, block_q, block_m, atol, rtol, key):
        kx, k1, k2, k3, k4 = jax.random.split(key, 5)
        x = jax.random.normal(kx, (B, T, C), dtype=jnp.float32)
        bound = 1.0 / math.sqrt(C)
        w_qkv = jax.random.uniform(k1, (C, 3 * C), jnp.float32, -bound, bound)
        b_qkv = jax.random.uniform(k2, (3 * C,), jnp.float32, -bound, bound)
        w_proj = jax.random.uniform(k3, (C, C), jnp.float32, -bound, bound)
        b_proj = jax.random.uniform(k4, (C,), jnp.float32, -bound, bound)

        ref = _reference(x, w_qkv, b_qkv, w_proj, b_proj, n_head)
        cast = lambda a: a.astype(dtype)
        out = causal_self_attention(cast(x), cast(w_qkv), cast(b_qkv),
                                    cast(w_proj), cast(b_proj), n_head,
                                    block_q=block_q, block_m=block_m)
        out = jax.block_until_ready(out).astype(jnp.float32)
        assert out.shape == (B, T, C)
        assert jnp.allclose(out, ref, atol=atol, rtol=rtol), (
            f"mismatch dtype={dtype.__name__} B={B} T={T} C={C} H={n_head}: "
            f"max abs err = {float(jnp.max(jnp.abs(out - ref)))}")

    key = jax.random.PRNGKey(0)
    k_small, k_med = jax.random.split(key)

    # Small config consistent with the module (T=8, n_embd divisible by n_head).
    _run_case(2, 8, 32, 4, jnp.float32, 512, 512, 1e-2, 1e-2, k_small)
    _run_case(2, 8, 32, 4, jnp.bfloat16, 512, 512, 7.5e-2, 7.5e-2, k_small)

    # Larger check exercising the multi-block triangular schedule
    # (interior + diagonal paths, D=64 heads, multiple row tiles).
    _run_case(2, 512, 256, 4, jnp.float32, 128, 256, 1e-2, 1e-2, k_med)
    _run_case(2, 512, 256, 4, jnp.bfloat16, 128, 256, 7.5e-2, 7.5e-2, k_med)

    print("KERNEL_OK")
</pallas_src>

<mosaic_0001>
module attributes {stable_mosaic.version = 11 : i64} {
  func.func @_linear_kernel(%arg0: i32, %arg1: i32, %arg2: memref<16x32xf32, #tpu.memory_space<vmem>>, %arg3: memref<32x96xf32, #tpu.memory_space<vmem>>, %arg4: memref<1x96xf32, #tpu.memory_space<vmem>>, %arg5: memref<16x96xf32, #tpu.memory_space<vmem>>) attributes {dimension_semantics = [#tpu.dimension_semantics<parallel>, #tpu.dimension_semantics<parallel>], iteration_bounds = array<i64: 1, 1>, scalar_prefetch = 0 : i64, scratch_operands = 0 : i64, tpu.core_type = #tpu.core_type<tc>, window_params = [{transform_indices = @transform_0, window_bounds = array<i64: 16, 32>}, {transform_indices = @transform_1, window_bounds = array<i64: 32, 96>}, {transform_indices = @transform_2, window_bounds = array<i64: 1, 96>}, {transform_indices = @transform_3, window_bounds = array<i64: 16, 96>}]} {
    %c0 = arith.constant 0 : index
    %c0_0 = arith.constant 0 : index
    %0 = vector.load %arg2[%c0, %c0_0] : memref<16x32xf32, #tpu.memory_space<vmem>>, vector<16x32xf32>
    %c0_1 = arith.constant 0 : index
    %c0_2 = arith.constant 0 : index
    %1 = vector.load %arg3[%c0_1, %c0_2] : memref<32x96xf32, #tpu.memory_space<vmem>>, vector<32x96xf32>
    %cst = arith.constant dense<0.000000e+00> : vector<16x96xf32>
    %2 = tpu.matmul %0, %1, %cst {dimension_numbers = #tpu.dot_dimension_numbers<[1], [0], [0], [1], [0, 0, 1, 1], [], []>} : vector<16x32xf32>, vector<32x96xf32>, vector<16x96xf32> -> vector<16x96xf32>
    %c0_3 = arith.constant 0 : index
    %c0_4 = arith.constant 0 : index
    %3 = vector.load %arg4[%c0_3, %c0_4] : memref<1x96xf32, #tpu.memory_space<vmem>>, vector<1x96xf32>
    %4 = vector.broadcast %3 : vector<1x96xf32> to vector<16x96xf32>
    %5 = arith.addf %2, %4 : vector<16x96xf32>
    %c0_5 = arith.constant 0 : index
    %c0_6 = arith.constant 0 : index
    %6 = vector.load %arg5[%c0_5, %c0_6] : memref<16x96xf32, #tpu.memory_space<vmem>>, vector<16x96xf32>
    tpu.vector_store %arg5[%c0_5, %c0_6], %5 {strides = array<i32>} : memref<16x96xf32, #tpu.memory_space<vmem>>, vector<16x96xf32>,
    return
  }
  func.func @transform_0(%arg0: i32, %arg1: i32) -> (i32, i32) {
    %c0_i32 = arith.constant 0 : i32
    %c0_i32_0 = arith.constant 0 : i32
    return %arg1, %c0_i32 : i32, i32
  }
  func.func @transform_1(%arg0: i32, %arg1: i32) -> (i32, i32) {
    %c0_i32 = arith.constant 0 : i32
    %c0_i32_0 = arith.constant 0 : i32
    return %c0_i32, %arg0 : i32, i32
  }
  func.func @transform_2(%arg0: i32, %arg1: i32) -> (i32, i32) {
    %c0_i32 = arith.constant 0 : i32
    %c0_i32_0 = arith.constant 0 : i32
    return %c0_i32, %arg0 : i32, i32
  }
  func.func @transform_3(%arg0: i32, %arg1: i32) -> (i32, i32) {
    %c0_i32 = arith.constant 0 : i32
    return %arg1, %arg0 : i32, i32
  }
}

</mosaic_0001>

<bundles_post_ra>
// kernel: tpu_custom_call.1
= control target key start
LH: loop header
LB: loop body
LE: loop exit
PB: predicated region body
PF: predicated region fallthrough
CT: control target
= control target key end

     0   :  { %8 = vsyncpa [#allocation3], 0  ;;  %s337_s0 = inlined_call_operand.hbm [shape: f32[16,32], index: 0, kind: input, shape index: {}]   ;;  %s338_s1 = inlined_call_operand.hbm [shape: f32[32,96], index: 1, kind: input, shape index: {}]   ;;  %s339_s2 = inlined_call_operand.vmem [shape: f32[1,96], index: 2, kind: input, shape index: {}]   ;;  %s340_s3 = inlined_call_operand.hbm [shape: f32[16,96], index: 3, kind: output, shape index: {}]  }
   0x1   :  { %9 = vsyncpa [#allocation6], 0 }
   0x2   :  { %10 = vsyncpa [#allocation4], 0  ;;  %s264_s12 = smov [#allocation2]   ;;  %s192_s16 = scalar_lea.hbm %s337_s0, 256 }
   0x3   :  { %s16_s13 = sshll.u32 %s264_s12, 4  ;;  %p193_p0 = scmp.ne.s32.totalorder %s337_s0, %s192_s16  ;;  %s17_s13 = int_to_ptr.vmem [resolvable:$true] %s16_s13 }
   0x4   :  { %p196_p1 = scmp.lt.u32.totalorder %s192_s16, %s337_s0 }
   0x6   :  { %p198_p2 = pnand %p196_p1, %p193_p0 }
   0x8   :  { %201 = shalt.err (!%p198_p2)
}
   0x9   :  { %s202_s21 = scalar_lea.vmem %s17_s13, 256  ;;  %p207_p4 = scmp.lt.s32.totalorder %s17_s13, %s17_s13 }
   0xa   :  { %p203_p3 = scmp.ne.s32.totalorder %s17_s13, %s202_s21  ;;  %p208_p5 = scmp.lt.s32.totalorder %s202_s21, %s202_s21 }
   0xc   :  { %p209_p6 = por %p208_p5, %p207_p4 }
   0xe   :  { %p210_p7 = pnand %p209_p6, %p203_p3 }
  0x10   :  { %213 = shalt.err (!%p210_p7)
}
  0x11   :  { %s265_s22 = smov 128   ;;  %s266_s23 = smov 8  }
  0x12   :  { %22 = dma.hbm_to_vmem [thread:$0]  %s337_s0, 256, %s17_s13, [#allocation3], %s265_s22, %s265_s22, %s266_s23  }
  0x13   :  { %s267_s26 = smov [#allocation5]   ;;  %s214_s30 = scalar_lea.hbm %s338_s1, 512 }
  0x14   :  { %s28_s27 = sshll.u32 %s267_s26, 4  ;;  %p215_p8 = scmp.ne.s32.totalorder %s338_s1, %s214_s30  ;;  %s29_s27 = int_to_ptr.vmem [resolvable:$true] %s28_s27 }
  0x15   :  { %p218_p9 = scmp.lt.u32.totalorder %s214_s30, %s338_s1 }
  0x17   :  { %p220_p10 = pnand %p218_p9, %p215_p8 }
  0x19   :  { %223 = shalt.err (!%p220_p10)
}
  0x1a   :  { %s224_s8 = scalar_lea.vmem %s29_s27, 512  ;;  %p229_p12 = scmp.lt.s32.totalorder %s29_s27, %s29_s27 }
  0x1b   :  { %p225_p11 = scmp.ne.s32.totalorder %s29_s27, %s224_s8  ;;  %p230_p13 = scmp.lt.s32.totalorder %s224_s8, %s224_s8 }
  0x1d   :  { %p231_p0 = por %p230_p13, %p229_p12 }
  0x1f   :  { %p232_p1 = pnand %p231_p0, %p225_p11 }
  0x21   :  { %235 = shalt.err (!%p232_p1)
}
  0x22   :  { %34 = dma.hbm_to_vmem [thread:$0]  %s338_s1, 512, %s29_s27, [#allocation6], %s265_s22, %s265_s22, %s266_s23  }
  0x23   :  { %258 = dma.done.wait [#allocation3], 256  }
  0x24   :  { %259 = vsyncadd [#allocation3], 4294967040 }
  0x25   :  { %260 = dma.done.wait [#allocation6], 512  }
  0x26   :  { %261 = vsyncadd [#allocation6], 4294966784  ;;  %vm56_vm0 = vcmask 261120   ;;  %v45_v0 = vld [vmem:[#allocation5] sm:$0xff]  ;;  %v46_v1 = vld [vmem:[#allocation5 + $0x8] sm:$0xff]  ;;  %s268_s11 = smov [#allocation7]  }
  0x27   :  { %v47_v2 = vld [vmem:[#allocation5 + $0x10] sm:$0xff]  ;;  %v179_v3 = vpack.c.bf16 %v46_v1, %v45_v0  ;;  %v48_v4 = vld [vmem:[#allocation5 + $0x18] sm:$0xff]  ;;  %s146_s12 = sshll.u32 %s268_s11, 4  ;;  %vm138_vm1 = vcmask 785408   ;;  %s147_s12 = int_to_ptr.vmem [resolvable:$true] %s146_s12 }
  0x28   :  { %v43_v5 = vld [vmem:[#allocation2] sm:$0xff]  ;;  %v183_v6 = vpack.c.bf16 %v48_v4, %v47_v2  ;;  %v44_v7 = vld [vmem:[#allocation2 + $0x8] sm:$0xff]  ;;  %s236_s13 = scalar_lea.vmem %s147_s12, 256  ;;  %p241_p3 = scmp.lt.s32.totalorder %s147_s12, %s147_s12 }
  0x29   :  { %176 = vmatprep.mubr.msk.f32.mxu0 %vm56_vm0, %v43_v5  ;;  %180 = vmatprep.subr.bf16.mxu0 %v179_v3  ;;  %v159_v8 = vld [vmem:[%s339_s2] ss:$0 sm:$0xff]  ;;  %p237_p2 = scmp.ne.s32.totalorder %s147_s12, %s236_s13  ;;  %p242_p4 = scmp.lt.s32.totalorder %s236_s13, %s236_s13 }
  0x2a   :  { %182 = vmatpush3.bf16.msra.mxu0 %v179_v3 }
  0x2b   :  { %184 = vmatprep.subr.bf16.mxu0 %v183_v6  ;;  %p243_p5 = por %p242_p4, %p241_p3 }
  0x2d   :  { %p244_p6 = pnand %p243_p5, %p237_p2 }
  0x2e   :  { %186 = vmatpush3.bf16.msra.mxu0 %v183_v6 }
  0x31   :  { %177 = vmatmul.mubr.msk.f32.vlgmr.msra.gmra.mrb[0].mxu0 %vm56_vm0, %v44_v7 }
 0x104   :  { %v178_v9 = vpop.f32.mrb[0].mxu0 }
 0x105   :  { %v135_v10 = vadd.f32 %v178_v9, %v159_v8  ;;  %v129_v11 = vpop.f32.mrb[1].mxu0 }
 0x106   :  { %v130_v12 = vadd.f32 %v159_v8, %v129_v11 }
 0x107   :  { %140 = vst.msk [vmem:[#allocation7 + $0x8] sm:$0xff] %vm138_vm1, %v135_v10 }
 0x108   :  { %139 = vst.msk [vmem:[#allocation7] sm:$0xff] %vm138_vm1, %v130_v12 }
 0x109   :  { %247 = shalt.err (!%p244_p6)
}
 0x10a   :  { %s248_s2 = scalar_lea.hbm %s340_s3, 256 }
 0x10b   :  { %p249_p7 = scmp.ne.s32.totalorder %s340_s3, %s248_s2  ;;  %p252_p8 = scmp.lt.u32.totalorder %s248_s2, %s340_s3 }
 0x10d   :  { %p254_p9 = pnand %p252_p8, %p249_p7 }
 0x10f   :  { %257 = shalt.err (!%p254_p9)
}
 0x110   :  { %152 = dma.vmem_to_hbm [thread:$0]  %s147_s12, 256, %s340_s3, [#allocation4], %s265_s22, %s265_s22, %s266_s23  }
 0x111   :  { %262 = dma.done.wait [#allocation4], 256  }
 0x112   :  { %263 = vsyncadd [#allocation4], 4294967040 }
 0x113   :  { %156 = vsyncpa [#allocation3], 1 }
 0x114   :  { %157 = vsyncpa [#allocation6], 1 }
 0x115   :  { %158 = vsyncpa [#allocation4], 1 }

</bundles_post_ra>
